<compile_context>
chip_gen: v6e
topology: v6e:2x2x1
jax: 0.10.0
libtpu: 0.0.40
codegen_flags: <defaults>
</compile_context>

<pallas_src>
import math

import numpy as np
import jax
import jax.numpy as jnp
from jax.experimental import pallas as pl
from jax.experimental.pallas import tpu as pltpu


# ------------------------- DCT weight construction (glue) -------------------
def get_1d_dct(i, freq, L):
    result = math.cos(math.pi * freq * (i + 0.5) / L) / math.sqrt(L)
    if freq == 0:
        return result
    return result * math.sqrt(2)


def get_dct_weights(width, height, channel, fidx_u, fidx_v):
    w = np.zeros((channel, width, height), dtype=np.float32)
    c_part = channel // len(fidx_u)
    for i, (u_x, v_y) in enumerate(zip(fidx_u, fidx_v)):
        for t_x in range(width):
            for t_y in range(height):
                w[i * c_part:(i + 1) * c_part, t_x, t_y] = (
                    get_1d_dct(t_x, u_x, width) * get_1d_dct(t_y, v_y, height)
                )
    return w  # (C, W, H)


# ------------------------------- Pallas kernel -------------------------------
def _sfca_stream(x, dct, w1t, w2, cw):
    """One SFCA stream.  x: (B, C, HW); dct: (C, HW); w1t: (C, mid);
    w2: (C, mid); cw: (C, 1).  C stays on the sublane axis throughout."""
    xf = x.astype(jnp.float32)

    # Frequency-channel pooling: lane (HW) reduction, keep C on sublanes.
    y = jnp.sum(xf * dct[None, :, :], axis=2, keepdims=True)          # (B, C, 1)

    # Excitation MLP on the VPU (batched over B; mid=2 so no MXU).
    # h[b, m] = relu(sum_c w1t[c, m] * y[b, c])
    h = jnp.sum(w1t[None, :, :] * y, axis=1, keepdims=True)           # (B, 1, mid)
    h = jnp.maximum(h, 0.0)
    # z[b, c] = sigmoid(sum_m w2[c, m] * h[b, m]) -- produced directly (B, C, 1)
    z = jax.nn.sigmoid(jnp.sum(w2[None, :, :] * h, axis=2, keepdims=True))

    # 1x1 conv (1 output channel): sublane (C) reduction -> (B, 1, HW)
    con = jax.nn.sigmoid(jnp.sum(xf * cw[None, :, :], axis=1, keepdims=True))

    # x * z (channel attention) + x * con (spatial attention)
    return (xf * (z + con)).astype(x.dtype)


def facma_kernel(xr_ref, xd_ref, dct_ref,
                 w1r_ref, w2r_ref, cwr_ref,
                 w1d_ref, w2d_ref, cwd_ref,
                 or_ref, od_ref):
    dct = dct_ref[...]                                                 # shared
    or_ref[...] = _sfca_stream(xr_ref[...], dct,
                               w1r_ref[...], w2r_ref[...], cwr_ref[...])
    od_ref[...] = _sfca_stream(xd_ref[...], dct,
                               w1d_ref[...], w2d_ref[...], cwd_ref[...])


def facma_pallas(rgb, depth, dct_chw, params_rgb, params_depth):
    """Fused SFCA for both streams in a single (grid-less) pallas_call."""
    B, C, H, W = rgb.shape
    HW = H * W

    # Free row-major reshapes (no concat / data movement): lane dim = HW = 256.
    xr = rgb.reshape(B, C, HW)
    xd = depth.reshape(B, C, HW)
    dct = dct_chw.reshape(C, HW)

    w1r_t = params_rgb[0].T                  # (C, mid)  -- keep C on sublanes
    w2r = params_rgb[1]                      # (C, mid)
    cwr = params_rgb[2].reshape(C, 1)        # (C, 1)
    w1d_t = params_depth[0].T
    w2d = params_depth[1]
    cwd = params_depth[2].reshape(C, 1)

    itemsize = jnp.dtype(rgb.dtype).itemsize
    flops = int(2 * 6 * B * C * HW)                          # both streams
    transcendentals = int(2 * (B * C + B * HW))              # sigmoids
    bytes_accessed = int(2 * 2 * B * C * HW * itemsize       # x in + out, both streams
                         + C * HW * 4                        # dct
                         + 2 * (2 * C * 2 + C) * 4)          # tiny weights

    out_r, out_d = pl.pallas_call(
        facma_kernel,
        out_shape=(jax.ShapeDtypeStruct((B, C, HW), rgb.dtype),
                   jax.ShapeDtypeStruct((B, C, HW), depth.dtype)),
        # No grid / no BlockSpecs: every operand is a whole-array VMEM block,
        # so there is nothing to pipeline and no duplicate buffers.
        compiler_params=pltpu.CompilerParams(
            vmem_limit_bytes=32 * 1024 * 1024),
        cost_estimate=pl.CostEstimate(flops=flops,
                                      transcendentals=transcendentals,
                                      bytes_accessed=bytes_accessed),
    )(xr, xd, dct, w1r_t, w2r, cwr, w1d_t, w2d, cwd)

    return out_r.reshape(B, C, H, W), out_d.reshape(B, C, H, W)


# ------------------------------ Pure-JAX reference ---------------------------
def sfca_ref(x, dct_chw, w1, w2, conv_w):
    y = jnp.sum(x * dct_chw[None], axis=(2, 3))                        # (B, C)
    h = jnp.maximum(y @ w1.T, 0.0)
    z = jax.nn.sigmoid(h @ w2.T)                                       # (B, C)
    f_fca = x * z[:, :, None, None]
    con = jnp.einsum("bchw,c->bhw", x, conv_w)
    con = jax.nn.sigmoid(con)
    f_con = x * con[:, None]
    return f_fca + f_con


# ----------------------------------- FACMA -----------------------------------
def make_sfca_params(key, channel, mid):
    k1, k2, k3 = jax.random.split(key, 3)
    w1 = 0.1 * jax.random.normal(k1, (mid, channel), jnp.float32)  # Linear(channel->mid)
    w2 = 0.1 * jax.random.normal(k2, (channel, mid), jnp.float32)  # Linear(mid->channel)
    cw = 0.1 * jax.random.normal(k3, (channel,), jnp.float32)      # Conv2d(channel,1,1) weight
    return w1, w2, cw


def facma_forward(rgb, depth, dct_chw, params_rgb, params_depth):
    return facma_pallas(rgb, depth, dct_chw, params_rgb, params_depth)


if __name__ == "__main__":
    # Small shapes consistent with the module (reduction=16 => channel >= 16).
    B, C, H, W = 2, 32, 16, 16
    reduction = 16
    mid = C // reduction                       # = 2
    fidx_u, fidx_v = [0, 1], [0, 1]
    # SFCA scales the frequency indices by width // 8.
    fidx_u = [u * (W // 8) for u in fidx_u]
    fidx_v = [v * (W // 8) for v in fidx_v]

    dct_np = get_dct_weights(W, H, C, fidx_u, fidx_v)              # (C, H, W)
    dct = jnp.asarray(dct_np)

    key = jax.random.PRNGKey(0)
    k_rgb, k_depth, k_x1, k_x2 = jax.random.split(key, 4)
    params_rgb = make_sfca_params(k_rgb, C, mid)
    params_depth = make_sfca_params(k_depth, C, mid)

    rgb = jax.random.normal(k_x1, (B, C, H, W), jnp.float32)
    depth = jax.random.normal(k_x2, (B, C, H, W), jnp.float32)

    out_rgb, out_d = facma_forward(rgb, depth, dct, params_rgb, params_depth)
    jax.block_until_ready((out_rgb, out_d))

    # Correctness check against pure-JAX reference.
    ref_rgb = sfca_ref(rgb, dct, *params_rgb)
    ref_d = sfca_ref(depth, dct, *params_depth)
    assert np.allclose(np.asarray(out_rgb), np.asarray(ref_rgb), atol=5e-5, rtol=5e-5)
    assert np.allclose(np.asarray(out_d), np.asarray(ref_d), atol=5e-5, rtol=5e-5)

    print("KERNEL_OK")
</pallas_src>

<mosaic_0001>
module attributes {stable_mosaic.version = 11 : i64} {
  func.func @facma_kernel(%arg0: memref<2x32x256xf32, #tpu.memory_space<vmem>>, %arg1: memref<2x32x256xf32, #tpu.memory_space<vmem>>, %arg2: memref<32x256xf32, #tpu.memory_space<vmem>>, %arg3: memref<32x2xf32, #tpu.memory_space<vmem>>, %arg4: memref<32x2xf32, #tpu.memory_space<vmem>>, %arg5: memref<32x1xf32, #tpu.memory_space<vmem>>, %arg6: memref<32x2xf32, #tpu.memory_space<vmem>>, %arg7: memref<32x2xf32, #tpu.memory_space<vmem>>, %arg8: memref<32x1xf32, #tpu.memory_space<vmem>>, %arg9: memref<2x32x256xf32, #tpu.memory_space<vmem>>, %arg10: memref<2x32x256xf32, #tpu.memory_space<vmem>>) attributes {dimension_semantics = [], scalar_prefetch = 0 : i64, scratch_operands = 0 : i64, tpu.core_type = #tpu.core_type<tc>} {
    %c0 = arith.constant 0 : index
    %c0_0 = arith.constant 0 : index
    %0 = vector.load %arg2[%c0, %c0_0] : memref<32x256xf32, #tpu.memory_space<vmem>>, vector<32x256xf32>
    %c0_1 = arith.constant 0 : index
    %c0_2 = arith.constant 0 : index
    %c0_3 = arith.constant 0 : index
    %1 = vector.load %arg0[%c0_1, %c0_2, %c0_3] : memref<2x32x256xf32, #tpu.memory_space<vmem>>, vector<2x32x256xf32>
    %c0_4 = arith.constant 0 : index
    %c0_5 = arith.constant 0 : index
    %2 = vector.load %arg3[%c0_4, %c0_5] : memref<32x2xf32, #tpu.memory_space<vmem>>, vector<32x2xf32>
    %c0_6 = arith.constant 0 : index
    %c0_7 = arith.constant 0 : index
    %3 = vector.load %arg4[%c0_6, %c0_7] : memref<32x2xf32, #tpu.memory_space<vmem>>, vector<32x2xf32>
    %c0_8 = arith.constant 0 : index
    %c0_9 = arith.constant 0 : index
    %4 = vector.load %arg5[%c0_8, %c0_9] : memref<32x1xf32, #tpu.memory_space<vmem>>, vector<32x1xf32>
    %5 = vector.shape_cast %0 : vector<32x256xf32> to vector<1x32x256xf32>
    %6 = vector.broadcast %5 : vector<1x32x256xf32> to vector<2x32x256xf32>
    %7 = arith.mulf %1, %6 : vector<2x32x256xf32>
    %cst = arith.constant dense<0.000000e+00> : vector<2x32xf32>
    %8 = vector.multi_reduction <add>, %7, %cst [2] : vector<2x32x256xf32> to vector<2x32xf32>
    %9 = vector.shape_cast %8 : vector<2x32xf32> to vector<2x32x1xf32>
    %10 = vector.shape_cast %2 : vector<32x2xf32> to vector<1x32x2xf32>
    %11 = vector.broadcast %10 : vector<1x32x2xf32> to vector<2x32x2xf32>
    %12 = vector.broadcast %9 : vector<2x32x1xf32> to vector<2x32x2xf32>
    %13 = arith.mulf %11, %12 : vector<2x32x2xf32>
    %cst_10 = arith.constant dense<0.000000e+00> : vector<2x2xf32>
    %14 = vector.multi_reduction <add>, %13, %cst_10 [1] : vector<2x32x2xf32> to vector<2x2xf32>
    %15 = vector.shape_cast %14 : vector<2x2xf32> to vector<2x1x2xf32>
    %cst_11 = arith.constant 0.000000e+00 : f32
    %16 = vector.broadcast %cst_11 : f32 to vector<2x1x2xf32>
    %17 = arith.maximumf %15, %16 : vector<2x1x2xf32>
    %18 = vector.shape_cast %3 : vector<32x2xf32> to vector<1x32x2xf32>
    %19 = vector.broadcast %18 : vector<1x32x2xf32> to vector<2x32x2xf32>
    %20 = vector.broadcast %17 : vector<2x1x2xf32> to vector<2x32x2xf32>
    %21 = arith.mulf %19, %20 : vector<2x32x2xf32>
    %cst_12 = arith.constant dense<0.000000e+00> : vector<2x32xf32>
    %22 = vector.multi_reduction <add>, %21, %cst_12 [2] : vector<2x32x2xf32> to vector<2x32xf32>
    %23 = vector.shape_cast %22 : vector<2x32xf32> to vector<2x32x1xf32>
    %24 = arith.negf %23 : vector<2x32x1xf32>
    %25 = math.exp %24 : vector<2x32x1xf32>
    %cst_13 = arith.constant 1.000000e+00 : f32
    %26 = vector.broadcast %cst_13 : f32 to vector<2x32x1xf32>
    %27 = arith.addf %26, %25 : vector<2x32x1xf32>
    %28 = arith.divf %26, %27 : vector<2x32x1xf32>
    %29 = vector.shape_cast %4 : vector<32x1xf32> to vector<1x32x1xf32>
    %30 = vector.broadcast %29 : vector<1x32x1xf32> to vector<2x32x256xf32>
    %31 = arith.mulf %1, %30 : vector<2x32x256xf32>
    %cst_14 = arith.constant dense<0.000000e+00> : vector<2x256xf32>
    %32 = vector.multi_reduction <add>, %31, %cst_14 [1] : vector<2x32x256xf32> to vector<2x256xf32>
    %33 = vector.shape_cast %32 : vector<2x256xf32> to vector<2x1x256xf32>
    %34 = arith.negf %33 : vector<2x1x256xf32>
    %35 = math.exp %34 : vector<2x1x256xf32>
    %cst_15 = arith.constant 1.000000e+00 : f32
    %36 = vector.broadcast %cst_15 : f32 to vector<2x1x256xf32>
    %37 = arith.addf %36, %35 : vector<2x1x256xf32>
    %38 = arith.divf %36, %37 : vector<2x1x256xf32>
    %39 = vector.broadcast %28 : vector<2x32x1xf32> to vector<2x32x256xf32>
    %40 = vector.broadcast %38 : vector<2x1x256xf32> to vector<2x32x256xf32>
    %41 = arith.addf %39, %40 : vector<2x32x256xf32>
    %42 = arith.mulf %1, %41 : vector<2x32x256xf32>
    %c0_16 = arith.constant 0 : index
    %c0_17 = arith.constant 0 : index
    %c0_18 = arith.constant 0 : index
    %43 = vector.load %arg9[%c0_16, %c0_17, %c0_18] : memref<2x32x256xf32, #tpu.memory_space<vmem>>, vector<2x32x256xf32>
    tpu.vector_store %arg9[%c0_16, %c0_17, %c0_18], %42 {strides = array<i32>} : memref<2x32x256xf32, #tpu.memory_space<vmem>>, vector<2x32x256xf32>,
    %c0_19 = arith.constant 0 : index
    %c0_20 = arith.constant 0 : index
    %c0_21 = arith.constant 0 : index
    %44 = vector.load %arg1[%c0_19, %c0_20, %c0_21] : memref<2x32x256xf32, #tpu.memory_space<vmem>>, vector<2x32x256xf32>
    %c0_22 = arith.constant 0 : index
    %c0_23 = arith.constant 0 : index
    %45 = vector.load %arg6[%c0_22, %c0_23] : memref<32x2xf32, #tpu.memory_space<vmem>>, vector<32x2xf32>
    %c0_24 = arith.constant 0 : index
    %c0_25 = arith.constant 0 : index
    %46 = vector.load %arg7[%c0_24, %c0_25] : memref<32x2xf32, #tpu.memory_space<vmem>>, vector<32x2xf32>
    %c0_26 = arith.constant 0 : index
    %c0_27 = arith.constant 0 : index
    %47 = vector.load %arg8[%c0_26, %c0_27] : memref<32x1xf32, #tpu.memory_space<vmem>>, vector<32x1xf32>
    %48 = vector.shape_cast %0 : vector<32x256xf32> to vector<1x32x256xf32>
    %49 = vector.broadcast %48 : vector<1x32x256xf32> to vector<2x32x256xf32>
    %50 = arith.mulf %44, %49 : vector<2x32x256xf32>
    %cst_28 = arith.constant dense<0.000000e+00> : vector<2x32xf32>
    %51 = vector.multi_reduction <add>, %50, %cst_28 [2] : vector<2x32x256xf32> to vector<2x32xf32>
    %52 = vector.shape_cast %51 : vector<2x32xf32> to vector<2x32x1xf32>
    %53 = vector.shape_cast %45 : vector<32x2xf32> to vector<1x32x2xf32>
    %54 = vector.broadcast %53 : vector<1x32x2xf32> to vector<2x32x2xf32>
    %55 = vector.broadcast %52 : vector<2x32x1xf32> to vector<2x32x2xf32>
    %56 = arith.mulf %54, %55 : vector<2x32x2xf32>
    %cst_29 = arith.constant dense<0.000000e+00> : vector<2x2xf32>
    %57 = vector.multi_reduction <add>, %56, %cst_29 [1] : vector<2x32x2xf32> to vector<2x2xf32>
    %58 = vector.shape_cast %57 : vector<2x2xf32> to vector<2x1x2xf32>
    %cst_30 = arith.constant 0.000000e+00 : f32
    %59 = vector.broadcast %cst_30 : f32 to vector<2x1x2xf32>
    %60 = arith.maximumf %58, %59 : vector<2x1x2xf32>
    %61 = vector.shape_cast %46 : vector<32x2xf32> to vector<1x32x2xf32>
    %62 = vector.broadcast %61 : vector<1x32x2xf32> to vector<2x32x2xf32>
    %63 = vector.broadcast %60 : vector<2x1x2xf32> to vector<2x32x2xf32>
    %64 = arith.mulf %62, %63 : vector<2x32x2xf32>
    %cst_31 = arith.constant dense<0.000000e+00> : vector<2x32xf32>
    %65 = vector.multi_reduction <add>, %64, %cst_31 [2] : vector<2x32x2xf32> to vector<2x32xf32>
    %66 = vector.shape_cast %65 : vector<2x32xf32> to vector<2x32x1xf32>
    %67 = arith.negf %66 : vector<2x32x1xf32>
    %68 = math.exp %67 : vector<2x32x1xf32>
    %cst_32 = arith.constant 1.000000e+00 : f32
    %69 = vector.broadcast %cst_32 : f32 to vector<2x32x1xf32>
    %70 = arith.addf %69, %68 : vector<2x32x1xf32>
    %71 = arith.divf %69, %70 : vector<2x32x1xf32>
    %72 = vector.shape_cast %47 : vector<32x1xf32> to vector<1x32x1xf32>
    %73 = vector.broadcast %72 : vector<1x32x1xf32> to vector<2x32x256xf32>
    %74 = arith.mulf %44, %73 : vector<2x32x256xf32>
    %cst_33 = arith.constant dense<0.000000e+00> : vector<2x256xf32>
    %75 = vector.multi_reduction <add>, %74, %cst_33 [1] : vector<2x32x256xf32> to vector<2x256xf32>
    %76 = vector.shape_cast %75 : vector<2x256xf32> to vector<2x1x256xf32>
    %77 = arith.negf %76 : vector<2x1x256xf32>
    %78 = math.exp %77 : vector<2x1x256xf32>
    %cst_34 = arith.constant 1.000000e+00 : f32
    %79 = vector.broadcast %cst_34 : f32 to vector<2x1x256xf32>
    %80 = arith.addf %79, %78 : vector<2x1x256xf32>
    %81 = arith.divf %79, %80 : vector<2x1x256xf32>
    %82 = vector.broadcast %71 : vector<2x32x1xf32> to vector<2x32x256xf32>
    %83 = vector.broadcast %81 : vector<2x1x256xf32> to vector<2x32x256xf32>
    %84 = arith.addf %82, %83 : vector<2x32x256xf32>
    %85 = arith.mulf %44, %84 : vector<2x32x256xf32>
    %c0_35 = arith.constant 0 : index
    %c0_36 = arith.constant 0 : index
    %c0_37 = arith.constant 0 : index
    %86 = vector.load %arg10[%c0_35, %c0_36, %c0_37] : memref<2x32x256xf32, #tpu.memory_space<vmem>>, vector<2x32x256xf32>
    tpu.vector_store %arg10[%c0_35, %c0_36, %c0_37], %85 {strides = array<i32>} : memref<2x32x256xf32, #tpu.memory_space<vmem>>, vector<2x32x256xf32>,
    return
  }
}

</mosaic_0001>

<bundles_post_ra>
// kernel: tpu_custom_call.1
= control target key start
LH: loop header
LB: loop body
LE: loop exit
PB: predicated region body
PF: predicated region fallthrough
CT: control target
= control target key end

     0   :  { %16 = vsyncpa [#allocation3], 0  ;;  %s1393_s0 = inlined_call_operand.vmem [shape: f32[2,32,256], index: 0, kind: input, shape index: {}]   ;;  %s1394_s1 = inlined_call_operand.hbm [shape: f32[2,32,256], index: 1, kind: input, shape index: {}]   ;;  %s1395_s2 = inlined_call_operand.vmem [shape: f32[32,256], index: 2, kind: input, shape index: {}]   ;;  %s1396_s3 = inlined_call_operand.vmem [shape: f32[32,2], index: 3, kind: input, shape index: {}]   ;;  %s1397_s4 = inlined_call_operand.vmem [shape: f32[32,2], index: 4, kind: input, shape index: {}]   ;;  %s1398_s5 = inlined_call_operand.vmem [shape: f32[32,1], index: 5, kind: input, shape index: {}]   ;;  %s1399_s6 = inlined_call_operand.vmem [shape: f32[32,2], index: 6, kind: input, shape index: {}]   ;;  %s1400_s7 = inlined_call_operand.vmem [shape: f32[32,2], index: 7, kind: input, shape index: {}]   ;;  %s1401_s8 = inlined_call_operand.vmem [shape: f32[32,1], index: 8, kind: input, shape index: {}]   ;;  %s1402_s9 = inlined_call_operand.hbm [shape: f32[2,32,256], index: 9, kind: output, shape index: {0}]   ;;  %s1403_s10 = inlined_call_operand.hbm [shape: f32[2,32,256], index: 10, kind: output, shape index: {1}]  }
   0x1   :  { %17 = vsyncpa [#allocation4], 0 }
   0x2   :  { %18 = vsyncpa [#allocation7], 0  ;;  %s964_s13 = smov [#allocation2]  }
   0x3   :  { %s26_s14 = sshll.u32 %s964_s13, 4  ;;  %s27_s14 = int_to_ptr.vmem [resolvable:$true] %s26_s14 }
   0x4   :  { %s906_s15 = scalar_lea.vmem %s27_s14, 2048  ;;  %p911_p1 = scmp.lt.s32.totalorder %s27_s14, %s27_s14 }
   0x5   :  { %p907_p0 = scmp.ne.s32.totalorder %s27_s14, %s906_s15  ;;  %p912_p2 = scmp.lt.s32.totalorder %s906_s15, %s906_s15 }
   0x7   :  { %p913_p3 = por %p912_p2, %p911_p1 }
   0x9   :  { %p914_p4 = pnand %p913_p3, %p907_p0 }
   0xb   :  { %917 = shalt.err (!%p914_p4)
}
   0xc   :  { %s965_s16 = smov 256   ;;  %s966_s17 = smov 16  }
   0xd   :  { %32 = dma.hbm_to_vmem [thread:$0]  %s1394_s1, 2048, %s27_s14, [#allocation3], %s965_s16, %s965_s16, %s966_s17  }
   0xe   :  { %958 = dma.done.wait [#allocation3], 2048  }
   0xf   :  { %959 = vsyncadd [#allocation3], 4294965248  ;;  %v967_v0 = vmov 0   ;;  %v50_v1 = vld [vmem:[%s1395_s2] sm:$0xff]  ;;  %v51_v2 = vld [vmem:[%s1395_s2 + $0x8] sm:$0xff]  ;;  %vm134_vm0 = vcmask 15360  }
  0x10   :  { %779 = vset.pattern.permute.xlu1 %v967_v0  ;;  %778 = vset.pattern.permute.xlu0 %v967_v0  ;;  %v1040_v3 = vld [vmem:[%s1393_s0 + $0x40] sm:$0xff]  ;;  %v1045_v4 = vld [vmem:[%s1393_s0 + $0x48] sm:$0xff]  ;;  %v52_v11 = vld [vmem:[%s1395_s2 + $0x10] sm:$0xff] }
  0x11   :  { %v94_v5 = vmul.f32 %v1040_v3, %v50_v1  ;;  %v1051_v6 = vld [vmem:[%s1393_s0] sm:$0xff]  ;;  %v1056_v7 = vld [vmem:[%s1393_s0 + $0x8] sm:$0xff]  ;;  %v95_v8 = vmul.f32 %v1045_v4, %v51_v2  ;;  %v53_v12 = vld [vmem:[%s1395_s2 + $0x18] sm:$0xff] }
  0x12   :  { %v86_v9 = vmul.f32 %v1051_v6, %v50_v1  ;;  %v87_v10 = vmul.f32 %v1056_v7, %v51_v2  ;;  %v1070_v13 = vld [vmem:[%s1393_s0 + $0x50] sm:$0xff]  ;;  %v1075_v14 = vld [vmem:[%s1393_s0 + $0x58] sm:$0xff]  ;;  %v1094_v24 = vld [vmem:[#allocation2] sm:$0xff] }
  0x13   :  { %v96_v15 = vmul.f32 %v1070_v13, %v52_v11  ;;  %v1081_v16 = vld [vmem:[%s1393_s0 + $0x10] sm:$0xff]  ;;  %v1086_v17 = vld [vmem:[%s1393_s0 + $0x18] sm:$0xff]  ;;  %v114_v18 = vadd.f32 %v95_v8, %v94_v5  ;;  %v97_v20 = vmul.f32 %v1075_v14, %v53_v12  ;;  %v1099_v28 = vld [vmem:[#allocation2 + $0x8] sm:$0xff]  ;;  %v415_v30 = vmul.f32 %v1094_v24, %v50_v1 }
  0x14   :  { %v102_v19 = vadd.f32 %v87_v10, %v86_v9  ;;  %v88_v21 = vmul.f32 %v1081_v16, %v52_v11  ;;  %v1090_v22 = vld [vmem:[#allocation2 + $0x10] sm:$0xff]  ;;  %v1092_v23 = vld [vmem:[#allocation2 + $0x18] sm:$0xff]  ;;  %v89_v25 = vmul.f32 %v1086_v17, %v53_v12  ;;  %v416_v31 = vmul.f32 %v1099_v28, %v51_v2  ;;  %v1107_v35 = vld [vmem:[#allocation2 + $0x40] sm:$0xff] }
  0x15   :  { %v417_v26 = vmul.f32 %v1090_v22, %v52_v11  ;;  %v418_v27 = vmul.f32 %v1092_v23, %v53_v12  ;;  %115 = vadd.xlane.f32.xlu1 %v114_v18  ;;  %v117_v29 = vadd.f32 %v97_v20, %v96_v15  ;;  %v1103_v32 = vld [vmem:[#allocation2 + $0x50] sm:$0xff]  ;;  %v1105_v33 = vld [vmem:[#allocation2 + $0x58] sm:$0xff]  ;;  %v1109_v36 = vld [vmem:[#allocation2 + $0x48] sm:$0xff]  ;;  %v423_v42 = vmul.f32 %v1107_v35, %v50_v1 }
  0x16   :  { %103 = vadd.xlane.f32.xlu0 %v102_v19  ;;  %v105_v34 = vadd.f32 %v89_v25, %v88_v21  ;;  %v425_v38 = vmul.f32 %v1103_v32, %v52_v11  ;;  %v426_v39 = vmul.f32 %v1105_v33, %v53_v12  ;;  %v54_v40 = vld [vmem:[%s1395_s2 + $0x20] sm:$0xff]  ;;  %v431_v41 = vadd.f32 %v416_v31, %v415_v30  ;;  %v55_v44 = vld [vmem:[%s1395_s2 + $0x28] sm:$0xff]  ;;  %v56_v62 = vld [vmem:[%s1395_s2 + $0x30] sm:$0xff] }
  0x17   :  { %v434_v37 = vadd.f32 %v418_v27, %v417_v26  ;;  %v424_v43 = vmul.f32 %v1109_v36, %v51_v2  ;;  %v1124_v45 = vld [vmem:[%s1393_s0 + $0x60] sm:$0xff]  ;;  %v1129_v46 = vld [vmem:[%s1393_s0 + $0x68] sm:$0xff]  ;;  %v57_v2 = vld [vmem:[%s1395_s2 + $0x38] sm:$0xff] }
  0x18   :  { %v1134_v47 = vld [vmem:[%s1393_s0 + $0x20] sm:$0xff]  ;;  %v1139_v48 = vld [vmem:[%s1393_s0 + $0x28] sm:$0xff]  ;;  %v446_v49 = vadd.f32 %v426_v39, %v425_v38  ;;  %v98_v50 = vmul.f32 %v1124_v45, %v54_v40  ;;  %v99_v51 = vmul.f32 %v1129_v46, %v55_v44  ;;  %v1166_v5 = vld [vmem:[%s1393_s0 + $0x70] sm:$0xff] }
  0x19   :  { %118 = vadd.xlane.f32.xlu1 %v117_v29  ;;  %v443_v52 = vadd.f32 %v424_v43, %v423_v42  ;;  %v90_v53 = vmul.f32 %v1134_v47, %v54_v40  ;;  %v91_v54 = vmul.f32 %v1139_v48, %v55_v44  ;;  %v1145_v55 = vld [vmem:[#allocation2 + $0x60] sm:$0xff]  ;;  %v1147_v56 = vld [vmem:[#allocation2 + $0x68] sm:$0xff]  ;;  %v1171_v8 = vld [vmem:[%s1393_s0 + $0x78] sm:$0xff]  ;;  %v100_v12 = vmul.f32 %v1166_v5, %v56_v62 }
  0x1a   :  { %106 = vadd.xlane.f32.xlu0 %v105_v34  ;;  %v1149_v57 = vld [vmem:[#allocation2 + $0x20] sm:$0xff]  ;;  %v1151_v58 = vld [vmem:[#allocation2 + $0x28] sm:$0xff]  ;;  %v120_v59 = vadd.f32 %v99_v51, %v98_v50  ;;  %v427_v60 = vmul.f32 %v1145_v55, %v54_v40  ;;  %v428_v61 = vmul.f32 %v1147_v56, %v55_v44  ;;  %v1176_v9 = vld [vmem:[%s1393_s0 + $0x30] sm:$0xff]  ;;  %v101_v15 = vmul.f32 %v1171_v8, %v57_v2 }
  0x1b   :  { %v108_v63 = vadd.f32 %v91_v54, %v90_v53  ;;  %v419_v0 = vmul.f32 %v1149_v57, %v54_v40  ;;  %v420_v1 = vmul.f32 %v1151_v58, %v55_v44  ;;  %v1181_v10 = vld [vmem:[%s1393_s0 + $0x38] sm:$0xff]  ;;  %v92_v19 = vmul.f32 %v1176_v9, %v56_v62  ;;  %v1187_v21 = vld [vmem:[#allocation2 + $0x70] sm:$0xff]  ;;  %v411_v42 = vld [vmem:[%s1401_s8] sm:$0xff] }
  0x1c   :  { %v449_v11 = vadd.f32 %v428_v61, %v427_v60  ;;  %v93_v20 = vmul.f32 %v1181_v10, %v57_v2  ;;  %v1189_v25 = vld [vmem:[#allocation2 + $0x78] sm:$0xff]  ;;  %v1191_v26 = vld [vmem:[#allocation2 + $0x30] sm:$0xff]  ;;  %v429_v29 = vmul.f32 %v1187_v21, %v56_v62  ;;  %v123_v34 = vadd.f32 %v101_v15, %v100_v12  ;;  %v82_v43 = vld [vmem:[%s1398_s5] sm:$0xff] }
  0x1d   :  { %435 = vadd.xlane.f32.xlu1 %v434_v37  ;;  %v437_v18 = vadd.f32 %v420_v1, %v419_v0  ;;  %v1193_v27 = vld [vmem:[#allocation2 + $0x38] sm:$0xff]  ;;  %v430_v30 = vmul.f32 %v1189_v25, %v57_v2  ;;  %v421_v31 = vmul.f32 %v1191_v26, %v56_v62  ;;  %v412_v44 = vld [vmem:[%s1401_s8 + $0x8] sm:$0xff]  ;;  %v413_v50 = vld [vmem:[%s1401_s8 + $0x10] sm:$0xff] }
  0x1e   :  { %432 = vadd.xlane.f32.xlu0 %v431_v41  ;;  %v111_v37 = vadd.f32 %v93_v20, %v92_v19  ;;  %v422_v38 = vmul.f32 %v1193_v27, %v57_v2  ;;  %v83_v41 = vld [vmem:[%s1398_s5 + $0x8] sm:$0xff]  ;;  %v85_v51 = vld [vmem:[%s1398_s5 + $0x18] sm:$0xff]  ;;  %v74_v2 = vld [vmem:[%s1396_s3] sm:$0xff] }
  0x1f   :  { %v452_v39 = vadd.f32 %v430_v30, %v429_v29  ;;  %v75_v1 = vld [vmem:[%s1396_s3 + $0x8] sm:$0xff]  ;;  %v76_v12 = vld [vmem:[%s1396_s3 + $0x10] sm:$0xff]  ;;  %v403_v30 = vld [vmem:[%s1399_s6] sm:$0xff] }
  0x20   :  { %v440_v40 = vadd.f32 %v422_v38, %v421_v31  ;;  %v404_v29 = vld [vmem:[%s1399_s6 + $0x8] sm:$0xff] }
  0x21   :  { %447 = vadd.xlane.f32.xlu1 %v446_v49  ;;  %v84_v49 = vld [vmem:[%s1398_s5 + $0x10] sm:$0xff] }
  0x22   :  { %444 = vadd.xlane.f32.xlu0 %v443_v52  ;;  %v414_v52 = vld [vmem:[%s1401_s8 + $0x18] sm:$0xff] }
  0x25   :  { %121 = vadd.xlane.f32.xlu1 %v120_v59 }
  0x26   :  { %109 = vadd.xlane.f32.xlu0 %v108_v63 }
  0x29   :  { %450 = vadd.xlane.f32.xlu1 %v449_v11 }
  0x2a   :  { %438 = vadd.xlane.f32.xlu0 %v437_v18 }
  0x2d   :  { %124 = vadd.xlane.f32.xlu1 %v123_v34 }
  0x2e   :  { %112 = vadd.xlane.f32.xlu0 %v111_v37 }
  0x31   :  { %453 = vadd.xlane.f32.xlu1 %v452_v39  ;;  %v405_v39 = vld [vmem:[%s1399_s6 + $0x10] sm:$0xff] }
  0x32   :  { %441 = vadd.xlane.f32.xlu0 %v440_v40 }
  0x42   :  { %250 = vperm.xlu1 %779, %v83_v41  }
  0x46   :  { %573 = vperm.xlu1 %779, %v411_v42  }
  0x48   :  { %245 = vperm.xlu0 %778, %v82_v43  }
  0x4a   :  { %578 = vperm.xlu1 %779, %v412_v44  }
  0x4e   :  { %255 = vperm.xlu1 %779, %v84_v49  }
  0x52   :  { %583 = vperm.xlu1 %779, %v413_v50  }
  0x56   :  { %260 = vperm.xlu1 %779, %v85_v51  }
  0x5a   :  { %588 = vperm.xlu1 %779, %v414_v52   ;;  %v77_v52 = vld [vmem:[%s1396_s3 + $0x18] sm:$0xff]  ;;  %s968_s3 = smov [#allocation5]  }
  0x5b   :  { %s720_s18 = sshll.u32 %s968_s3, 4  ;;  %s721_s18 = int_to_ptr.vmem [resolvable:$true] %s720_s18 }
  0x5c   :  { %s918_s22 = scalar_lea.vmem %s721_s18, 2048  ;;  %p923_p6 = scmp.lt.s32.totalorder %s721_s18, %s721_s18 }
  0x5d   :  { %p919_p5 = scmp.ne.s32.totalorder %s721_s18, %s918_s22  ;;  %p924_p7 = scmp.lt.s32.totalorder %s918_s22, %s918_s22 }
  0x5f   :  { %p925_p8 = por %p924_p7, %p923_p6 }
  0x61   :  { %p926_p9 = pnand %p925_p8, %p919_p5 }
  0x9e   :  { %v116_v53 = vpop.xlane.xlu1 %115 }
  0x9f   :  { %v104_v54 = vpop.xlane.xlu0 %103  ;;  %v130_v11 = vmul.f32 %v116_v53, %v74_v2 }
  0xa0   :  { %v126_v31 = vmul.f32 %v104_v54, %v74_v2 }
  0xa1   :  { %v148_v38 = vsel %vm134_vm0, %v130_v11, 0.0 }
  0xa2   :  { %v119_v59 = vpop.xlane.xlu1 %118  ;;  %v135_v53 = vsel %vm134_vm0, %v126_v31, 0.0 }
  0xa3   :  { %v107_v60 = vpop.xlane.xlu0 %106  ;;  %v131_v19 = vmul.f32 %v119_v59, %v75_v1 }
  0xa4   :  { %v127_v20 = vmul.f32 %v107_v60, %v75_v1 }
  0xa5   :  { %v149_v42 = vsel %vm134_vm0, %v131_v19, 0.0 }
  0xa6   :  { %v436_v61 = vpop.xlane.xlu1 %435  ;;  %v136_v43 = vsel %vm134_vm0, %v127_v20, 0.0  ;;  %v150_v1 = vadd.f32 %v149_v42, %v148_v38 }
  0xa7   :  { %v433_v62 = vpop.xlane.xlu0 %432  ;;  %v456_v44 = vmul.f32 %v436_v61, %v404_v29  ;;  %v137_v2 = vadd.f32 %v136_v43, %v135_v53 }
  0xa8   :  { %v455_v49 = vmul.f32 %v433_v62, %v403_v30 }
  0xa9   :  { %v464_v61 = vsel %vm134_vm0, %v456_v44, 0.0 }
  0xaa   :  { %v448_v63 = vpop.xlane.xlu1 %447  ;;  %v463_v62 = vsel %vm134_vm0, %v455_v49, 0.0 }
  0xab   :  { %v445_v0 = vpop.xlane.xlu0 %444  ;;  %v460_v50 = vmul.f32 %v448_v63, %v404_v29  ;;  %v465_v38 = vadd.f32 %v464_v61, %v463_v62 }
  0xac   :  { %v459_v51 = vmul.f32 %v445_v0, %v403_v30  ;;  %v406_v30 = vld [vmem:[%s1399_s6 + $0x18] sm:$0xff] }
  0xae   :  { %v122_v15 = vpop.xlane.xlu1 %121  ;;  %v476_v19 = vsel %vm134_vm0, %v459_v51, 0.0 }
  0xaf   :  { %v110_v18 = vpop.xlane.xlu0 %109  ;;  %v132_v34 = vmul.f32 %v122_v15, %v76_v12 }
  0xb0   :  { %v128_v37 = vmul.f32 %v110_v18, %v76_v12  ;;  %v477_v18 = vsel %vm134_vm0, %v460_v50, 0.0 }
  0xb1   :  { %v151_v54 = vsel %vm134_vm0, %v132_v34, 0.0  ;;  %v478_v44 = vadd.f32 %v477_v18, %v476_v19 }
  0xb2   :  { %v451_v40 = vpop.xlane.xlu1 %450  ;;  %v138_v59 = vsel %vm134_vm0, %v128_v37, 0.0  ;;  %v152_v20 = vadd.f32 %v151_v54, %v150_v1 }
  0xb3   :  { %v439_v41 = vpop.xlane.xlu0 %438  ;;  %v461_v11 = vmul.f32 %v451_v40, %v405_v39  ;;  %v139_v29 = vadd.f32 %v138_v59, %v137_v2 }
  0xb4   :  { %v457_v60 = vmul.f32 %v439_v41, %v405_v39 }
  0xb5   :  { %v479_v39 = vsel %vm134_vm0, %v461_v11, 0.0 }
  0xb6   :  { %v125_v12 = vpop.xlane.xlu1 %124  ;;  %v466_v31 = vsel %vm134_vm0, %v457_v60, 0.0  ;;  %v480_v54 = vadd.f32 %v479_v39, %v478_v44  ;;  %v79_v39 = vld [vmem:[%s1397_s4 + $0x8] sm:$0xff] }
  0xb7   :  { %v113_v15 = vpop.xlane.xlu0 %112  ;;  %v133_v63 = vmul.f32 %v125_v12, %v77_v52  ;;  %v467_v51 = vadd.f32 %v466_v31, %v465_v38 }
  0xb8   :  { %v129_v0 = vmul.f32 %v113_v15, %v77_v52 }
  0xb9   :  { %v153_v34 = vsel %vm134_vm0, %v133_v63, 0.0 }
  0xba   :  { %v140_v37 = vsel %vm134_vm0, %v129_v0, 0.0  ;;  %v154_v40 = vadd.f32 %v153_v34, %v152_v20  ;;  %v454_v42 = vpop.xlane.xlu1 %453 }
  0xbb   :  { %v141_v41 = vadd.f32 %v140_v37, %v139_v29  ;;  %v442_v43 = vpop.xlane.xlu0 %441  ;;  %v462_v49 = vmul.f32 %v454_v42, %v406_v30  ;;  %v80_v42 = vld [vmem:[%s1397_s4 + $0x10] sm:$0xff] }
  0xbc   :  { %v458_v50 = vmul.f32 %v442_v43, %v406_v30  ;;  %v155_v52 = vrot.slane %v154_v40, 4  ;;  %v81_v43 = vld [vmem:[%s1397_s4 + $0x18] sm:$0xff] }
  0xbd   :  { %v142_v53 = vrot.slane %v141_v41, 4  ;;  %v481_v59 = vsel %vm134_vm0, %v462_v49, 0.0 }
  0xbe   :  { %v468_v60 = vsel %vm134_vm0, %v458_v50, 0.0  ;;  %v156_v1 = vadd.f32 %v155_v52, %v154_v40  ;;  %v482_v15 = vadd.f32 %v481_v59, %v480_v54  ;;  %v78_v40 = vld [vmem:[%s1397_s4] sm:$0xff] }
  0xbf   :  { %v143_v2 = vadd.f32 %v142_v53, %v141_v41  ;;  %v469_v12 = vadd.f32 %v468_v60, %v467_v51 }
  0xc0   :  { %v157_v11 = vrot.slane %v156_v1, 2  ;;  %v483_v19 = vrot.slane %v482_v15, 4 }
  0xc1   :  { %v144_v61 = vrot.slane %v143_v2, 2  ;;  %v470_v62 = vrot.slane %v469_v12, 4 }
  0xc2   :  { %v158_v63 = vadd.f32 %v157_v11, %v156_v1  ;;  %v484_v37 = vadd.f32 %v483_v19, %v482_v15 }
  0xc3   :  { %v145_v0 = vadd.f32 %v144_v61, %v143_v2  ;;  %v471_v18 = vadd.f32 %v470_v62, %v469_v12 }
  0xc4   :  { %v159_v20 = vrot.slane %v158_v63, 1  ;;  %v485_v51 = vrot.slane %v484_v37, 2 }
  0xc5   :  { %v146_v29 = vrot.slane %v145_v0, 1  ;;  %v472_v30 = vrot.slane %v471_v18, 2 }
  0xc6   :  { %v160_v34 = vadd.f32 %v159_v20, %v158_v63  ;;  %v486_v1 = vadd.f32 %v485_v51, %v484_v37 }
  0xc7   :  { %v147_v31 = vadd.f32 %v146_v29, %v145_v0  ;;  %v473_v38 = vadd.f32 %v472_v30, %v471_v18  ;;  %v408_v29 = vld [vmem:[%s1400_s7 + $0x8] sm:$0xff]  ;;  %v407_v30 = vld [vmem:[%s1400_s7] sm:$0xff] }
  0xc8   :  { %v162_v50 = vmax.f32 %v160_v34, 0.0  ;;  %v487_v62 = vrot.slane %v486_v1, 1 }
  0xc9   :  { %v161_v41 = vmax.f32 %v147_v31, 0.0  ;;  %v474_v52 = vrot.slane %v473_v38, 1 }
  0xca   :  { %v167_v11 = vmul.f32 %v162_v50, %v78_v40  ;;  %v168_v61 = vmul.f32 %v162_v50, %v79_v39  ;;  %v169_v19 = vmul.f32 %v162_v50, %v80_v42  ;;  %v170_v20 = vmul.f32 %v162_v50, %v81_v43 }
  0xcb   :  { %v164_v44 = vmul.f32 %v161_v41, %v79_v39  ;;  %v163_v49 = vmul.f32 %v161_v41, %v78_v40  ;;  %v165_v59 = vmul.f32 %v161_v41, %v80_v42  ;;  %v166_v60 = vmul.f32 %v161_v41, %v81_v43  ;;  %v410_v40 = vld [vmem:[%s1400_s7 + $0x18] sm:$0xff]  ;;  %v409_v41 = vld [vmem:[%s1400_s7 + $0x10] sm:$0xff] }
  0xcc   :  { %v475_v2 = vadd.f32 %v474_v52, %v473_v38  ;;  %v183_v0 = vsel %vm134_vm0, %v167_v11, 0.0  ;;  %v186_v18 = vsel %vm134_vm0, %v168_v61, 0.0  ;;  %v488_v31 = vadd.f32 %v487_v62, %v486_v1  ;;  %v251_v11 = vpop.permute.xlu1 %250 }
  0xcd   :  { %v174_v53 = vsel %vm134_vm0, %v164_v44, 0.0  ;;  %v171_v54 = vsel %vm134_vm0, %v163_v49, 0.0  ;;  %v177_v12 = vsel %vm134_vm0, %v165_v59, 0.0  ;;  %v180_v15 = vsel %vm134_vm0, %v166_v60, 0.0 }
  0xce   :  { %175 = vadd.xlane.f32.xlu0 %v174_v53  ;;  %172 = vadd.xlane.f32.xlu1 %v171_v54  ;;  %v489_v63 = vmax.f32 %v475_v2, 0.0  ;;  %v189_v34 = vsel %vm134_vm0, %v169_v19, 0.0  ;;  %v192_v37 = vsel %vm134_vm0, %v170_v20, 0.0  ;;  %v490_v42 = vmax.f32 %v488_v31, 0.0 }
  0xcf   :  { %v266_v20 = vmul.f32 %v251_v11, %v1086_v17  ;;  %v273_v31 = vmul.f32 %v251_v11, %v1070_v13 }
  0xd0   :  { %v492_v38 = vmul.f32 %v489_v63, %v408_v29  ;;  %v491_v39 = vmul.f32 %v489_v63, %v407_v30  ;;  %v494_v49 = vmul.f32 %v489_v63, %v410_v40  ;;  %v493_v50 = vmul.f32 %v489_v63, %v409_v41  ;;  %v574_v61 = vpop.permute.xlu1 %573 }
  0xd1   :  { %v496_v53 = vmul.f32 %v490_v42, %v408_v29  ;;  %v495_v54 = vmul.f32 %v490_v42, %v407_v30  ;;  %v498_v1 = vmul.f32 %v490_v42, %v410_v40  ;;  %v497_v2 = vmul.f32 %v490_v42, %v409_v41 }
  0xd2   :  { %178 = vadd.xlane.f32.xlu0 %v177_v12  ;;  %181 = vadd.xlane.f32.xlu1 %v180_v15  ;;  %v502_v43 = vsel %vm134_vm0, %v492_v38, 0.0  ;;  %v499_v44 = vsel %vm134_vm0, %v491_v39, 0.0  ;;  %v508_v51 = vsel %vm134_vm0, %v494_v49, 0.0  ;;  %v505_v52 = vsel %vm134_vm0, %v493_v50, 0.0 }
  0xd3   :  { %v514_v59 = vsel %vm134_vm0, %v496_v53, 0.0  ;;  %v511_v60 = vsel %vm134_vm0, %v495_v54, 0.0  ;;  %v520_v12 = vsel %vm134_vm0, %v498_v1, 0.0  ;;  %v517_v15 = vsel %vm134_vm0, %v497_v2, 0.0 }
  0xd4   :  { %v579_v62 = vpop.permute.xlu1 %578  ;;  %v274_v39 = vmul.f32 %v251_v11, %v1075_v14  ;;  %v591_v14 = vmul.f32 %v574_v61, %v1094_v24  ;;  %v592_v54 = vmul.f32 %v574_v61, %v1099_v28 }
  0xd5   :  { %v594_v1 = vmul.f32 %v579_v62, %v1092_v23  ;;  %v601_v24 = vmul.f32 %v579_v62, %v1103_v32  ;;  %v602_v28 = vmul.f32 %v579_v62, %v1105_v33 }
  0xd6   :  { %184 = vadd.xlane.f32.xlu0 %v183_v0  ;;  %187 = vadd.xlane.f32.xlu1 %v186_v18  ;;  %v246_v0 = vpop.permute.xlu0 %245  ;;  %v265_v18 = vmul.f32 %v251_v11, %v1081_v16  ;;  %v600_v11 = vmul.f32 %v574_v61, %v1109_v36 }
  0xd7   :  { %v263_v19 = vmul.f32 %v246_v0, %v1051_v6  ;;  %v264_v30 = vmul.f32 %v246_v0, %v1056_v7  ;;  %v272_v41 = vmul.f32 %v246_v0, %v1045_v4  ;;  %v593_v4 = vmul.f32 %v579_v62, %v1090_v22 }
  0xd8   :  { %v256_v63 = vpop.permute.xlu1 %255 }
  0xd9   :  { %v279_v38 = vadd.f32 %v265_v18, %v263_v19  ;;  %v268_v40 = vmul.f32 %v256_v63, %v1139_v48  ;;  %v288_v42 = vadd.f32 %v266_v20, %v264_v30  ;;  %v276_v13 = vmul.f32 %v256_v63, %v1129_v46 }
  0xda   :  { %190 = vadd.xlane.f32.xlu0 %v189_v34  ;;  %193 = vadd.xlane.f32.xlu1 %v192_v37  ;;  %v267_v34 = vmul.f32 %v256_v63, %v1134_v47  ;;  %v271_v37 = vmul.f32 %v246_v0, %v1040_v3  ;;  %v306_v53 = vadd.f32 %v274_v39, %v272_v41 }
  0xdb   :  { %v289_v3 = vadd.f32 %v288_v42, %v268_v40  ;;  %v616_v19 = vadd.f32 %v594_v1, %v592_v54 }
  0xdc   :  { %v584_v29 = vpop.permute.xlu1 %583  ;;  %v280_v50 = vadd.f32 %v279_v38, %v267_v34  ;;  %v307_v46 = vadd.f32 %v306_v53, %v276_v13 }
  0xdd   :  { %v595_v22 = vmul.f32 %v584_v29, %v1149_v57  ;;  %v596_v23 = vmul.f32 %v584_v29, %v1151_v58  ;;  %v604_v36 = vmul.f32 %v584_v29, %v1147_v56 }
  0xde   :  { %503 = vadd.xlane.f32.xlu1 %v502_v43  ;;  %500 = vadd.xlane.f32.xlu0 %v499_v44  ;;  %v275_v44 = vmul.f32 %v256_v63, %v1124_v45  ;;  %v607_v63 = vadd.f32 %v593_v4, %v591_v14 }
  0xdf   :  { %v617_v57 = vadd.f32 %v616_v19, %v596_v23 }
  0xe0   :  { %v261_v43 = vpop.permute.xlu1 %260  ;;  %v608_v32 = vadd.f32 %v607_v63, %v595_v22 }
  0xe1   :  { %v269_v49 = vmul.f32 %v261_v43, %v1176_v9  ;;  %v278_v2 = vmul.f32 %v261_v43, %v1171_v8 }
  0xe2   :  { %509 = vadd.xlane.f32.xlu1 %v508_v51  ;;  %506 = vadd.xlane.f32.xlu0 %v505_v52  ;;  %v297_v51 = vadd.f32 %v273_v31, %v271_v37  ;;  %v270_v52 = vmul.f32 %v261_v43, %v1181_v10  ;;  %v634_v37 = vadd.f32 %v602_v28, %v600_v11 }
  0xe3   :  { %v308_v30 = vadd.f32 %v307_v46, %v278_v2 }
  0xe4   :  { %v298_v45 = vadd.f32 %v297_v51, %v275_v44  ;;  %v589_v31 = vpop.permute.xlu1 %588  ;;  %v635_v41 = vadd.f32 %v634_v37, %v604_v36 }
  0xe5   :  { %v597_v62 = vmul.f32 %v589_v31, %v1191_v26  ;;  %v309_v39 = vrot.slane %v308_v30, 4  ;;  %v598_v40 = vmul.f32 %v589_v31, %v1193_v27  ;;  %v605_v44 = vmul.f32 %v589_v31, %v1187_v21 }
  0xe6   :  { %515 = vadd.xlane.f32.xlu1 %v514_v59  ;;  %512 = vadd.xlane.f32.xlu0 %v511_v60  ;;  %v277_v59 = vmul.f32 %v261_v43, %v1166_v5  ;;  %v281_v60 = vadd.f32 %v280_v50, %v269_v49  ;;  %v606_v56 = vmul.f32 %v589_v31, %v1189_v25 }
  0xe7   :  { %v609_v49 = vadd.f32 %v608_v32, %v597_v62  ;;  %v310_v50 = vadd.f32 %v309_v39, %v308_v30 }
  0xe8   :  { %v282_v0 = vrot.slane %v281_v60, 4  ;;  %v299_v18 = vadd.f32 %v298_v45, %v277_v59  ;;  %v636_v27 = vadd.f32 %v635_v41, %v606_v56 }
  0xe9   :  { %v610_v26 = vrot.slane %v609_v49, 4  ;;  %v311_v53 = vrot.slane %v310_v50, 2 }
  0xea   :  { %521 = vadd.xlane.f32.xlu1 %v520_v12  ;;  %518 = vadd.xlane.f32.xlu0 %v517_v15  ;;  %v290_v12 = vadd.f32 %v289_v3, %v270_v52  ;;  %v599_v15 = vmul.f32 %v574_v61, %v1107_v35  ;;  %v603_v35 = vmul.f32 %v584_v29, %v1145_v55  ;;  %v300_v33 = vrot.slane %v299_v18, 4 }
  0xeb   :  { %v283_v61 = vadd.f32 %v282_v0, %v281_v60  ;;  %v618_v29 = vadd.f32 %v617_v57, %v598_v40  ;;  %v611_v59 = vadd.f32 %v610_v26, %v609_v49  ;;  %v312_v21 = vadd.f32 %v311_v53, %v310_v50 }
  0xec   :  { %v291_v20 = vrot.slane %v290_v12, 4  ;;  %v625_v34 = vadd.f32 %v601_v24, %v599_v15  ;;  %v301_v43 = vadd.f32 %v300_v33, %v299_v18  ;;  %v637_v2 = vrot.slane %v636_v27, 4 }
  0xed   :  { %v284_v42 = vrot.slane %v283_v61, 2  ;;  %v619_v14 = vrot.slane %v618_v29, 4  ;;  %v612_v25 = vrot.slane %v611_v59, 2  ;;  %v313_v24 = vrot.slane %v312_v21, 1 }
  0xee   :  { %v292_v38 = vadd.f32 %v291_v20, %v290_v12  ;;  %v626_v58 = vadd.f32 %v625_v34, %v603_v35  ;;  %v302_v13 = vrot.slane %v301_v43, 2  ;;  %v638_v63 = vadd.f32 %v637_v2, %v636_v27 }
  0xef   :  { %v285_v51 = vadd.f32 %v284_v42, %v283_v61  ;;  %v620_v1 = vadd.f32 %v619_v14, %v618_v29  ;;  %v613_v18 = vadd.f32 %v612_v25, %v611_v59  ;;  %v314_v23 = vadd.f32 %v313_v24, %v312_v21 }
  0xf0   :  { %v293_v55 = vrot.slane %v292_v38, 2  ;;  %v627_v52 = vadd.f32 %v626_v58, %v605_v44  ;;  %v303_v4 = vadd.f32 %v302_v13, %v301_v43  ;;  %v639_v31 = vrot.slane %v638_v63, 2 }
  0xf1   :  { %v286_v54 = vrot.slane %v285_v51, 1  ;;  %v621_v28 = vrot.slane %v620_v1, 2  ;;  %v614_v37 = vrot.slane %v613_v18, 1  ;;  %v759_v36 = vmul.f32 -1.442695, %v314_v23 }
  0xf2   :  { %v294_v3 = vadd.f32 %v293_v55, %v292_v38  ;;  %v628_v60 = vrot.slane %v627_v52, 4  ;;  %v304_v46 = vrot.slane %v303_v4, 1  ;;  %v640_v61 = vadd.f32 %v639_v31, %v638_v63 }
  0xf3   :  { %v287_v12 = vadd.f32 %v286_v54, %v285_v51  ;;  %v622_v30 = vadd.f32 %v621_v28, %v620_v1  ;;  %v615_v33 = vadd.f32 %v614_v37, %v613_v18 }
  0xf4   :  { %v295_v45 = vrot.slane %v294_v3, 1  ;;  %v629_v15 = vadd.f32 %v628_v60, %v627_v52  ;;  %v305_v22 = vadd.f32 %v304_v46, %v303_v4  ;;  %v641_v38 = vrot.slane %v640_v61, 1 }
  0xf5   :  { %v756_v0 = vmul.f32 -1.442695, %v287_v12  ;;  %v623_v32 = vrot.slane %v622_v30, 1  ;;  %v768_v41 = vmul.f32 -1.442695, %v615_v33 }
  0xf6   :  { %v296_v11 = vadd.f32 %v295_v45, %v294_v3  ;;  %v630_v19 = vrot.slane %v629_v15, 2  ;;  %v758_v34 = vmul.f32 -1.442695, %v305_v22  ;;  %v642_v44 = vadd.f32 %v641_v38, %v640_v61 }
  0xf7   :  { %780 = vpow2.f32 %v756_v0  ;;  %v624_v57 = vadd.f32 %v623_v32, %v622_v30 }
  0xf8   :  { %v757_v20 = vmul.f32 -1.442695, %v296_v11  ;;  %v631_v35 = vadd.f32 %v630_v19, %v629_v15  ;;  %v771_v26 = vmul.f32 -1.442695, %v642_v44 }
  0xf9   :  { %v769_v49 = vmul.f32 -1.442695, %v624_v57 }
  0xfa   :  { %782 = vpow2.f32 %v757_v20  ;;  %v632_v62 = vrot.slane %v631_v35, 1 }
  0xfb   :  { %784 = vpow2.f32 %v758_v34 }
  0xfc   :  { %786 = vpow2.f32 %v759_v36  ;;  %v633_v58 = vadd.f32 %v632_v62, %v631_v35 }
  0xfe   :  { %v770_v56 = vmul.f32 -1.442695, %v633_v58 }
 0x104   :  { %v781_v13 = vpop.eup %780 }
 0x105   :  { %v327_v14 = vadd.f32 1.0, %v781_v13 }
 0x107   :  { %v783_v52 = vpop.eup %782 }
 0x108   :  { %v785_v4 = vpop.eup %784  ;;  %v328_v59 = vadd.f32 1.0, %v783_v52 }
 0x109   :  { %v787_v60 = vpop.eup %786  ;;  %v329_v1 = vadd.f32 1.0, %v785_v4 }
 0x10a   :  { %v330_v46 = vadd.f32 1.0, %v787_v60 }
 0x157   :  { %v173_v39 = vpop.xlane.xlu1 %172  ;;  %v176_v40 = vpop.xlane.xlu0 %175 }
 0x158   :  { %v748_v42 = vmul.f32 -1.442695, %v173_v39  ;;  %v749_v43 = vmul.f32 -1.442695, %v176_v40 }
 0x15a   :  { %788 = vpow2.f32 %v748_v42 }
 0x15b   :  { %790 = vpow2.f32 %v749_v43  ;;  %v182_v55 = vpop.xlane.xlu1 %181  ;;  %v179_v50 = vpop.xlane.xlu0 %178 }
 0x15c   :  { %792 = vpow2.f32 %v768_v41  ;;  %v751_v29 = vmul.f32 -1.442695, %v182_v55  ;;  %v750_v51 = vmul.f32 -1.442695, %v179_v50 }
 0x15d   :  { %794 = vpow2.f32 %v769_v49 }
 0x15e   :  { %796 = vpow2.f32 %v751_v29 }
 0x15f   :  { %798 = vpow2.f32 %v750_v51  ;;  %v188_v3 = vpop.xlane.xlu1 %187  ;;  %v185_v53 = vpop.xlane.xlu0 %184 }
 0x160   :  { %800 = vpow2.f32 %v770_v56  ;;  %v753_v27 = vmul.f32 -1.442695, %v188_v3  ;;  %v752_v54 = vmul.f32 -1.442695, %v185_v53 }
 0x161   :  { %802 = vpow2.f32 %v771_v26 }
 0x162   :  { %804 = vpow2.f32 %v753_v27 }
 0x163   :  { %806 = vpow2.f32 %v752_v54  ;;  %v194_v45 = vpop.xlane.xlu1 %193  ;;  %v191_v21 = vpop.xlane.xlu0 %190 }
 0x164   :  { %808 = vrcp.f32 %v327_v14  ;;  %v755_v2 = vmul.f32 -1.442695, %v194_v45  ;;  %v754_v12 = vmul.f32 -1.442695, %v191_v21 }
 0x165   :  { %810 = vrcp.f32 %v328_v59 }
 0x166   :  { %812 = vpow2.f32 %v755_v2 }
 0x167   :  { %v789_v25 = vpop.eup %788  ;;  %814 = vpow2.f32 %v754_v12  ;;  %v504_v15 = vpop.xlane.xlu1 %503 }
 0x168   :  { %v501_v11 = vpop.xlane.xlu0 %500  ;;  %v791_v24 = vpop.eup %790  ;;  %816 = vrcp.f32 %v329_v1  ;;  %v219_v28 = vadd.f32 1.0, %v789_v25  ;;  %v761_v63 = vmul.f32 -1.442695, %v504_v15 }
 0x169   :  { %v793_v22 = vpop.eup %792  ;;  %818 = vrcp.f32 %v330_v46  ;;  %v220_v0 = vadd.f32 1.0, %v791_v24  ;;  %v760_v18 = vmul.f32 -1.442695, %v501_v11 }
 0x16a   :  { %v795_v19 = vpop.eup %794  ;;  %820 = vrcp.f32 %v219_v28  ;;  %v655_v3 = vadd.f32 1.0, %v793_v22 }
 0x16b   :  { %v797_v23 = vpop.eup %796  ;;  %822 = vrcp.f32 %v220_v0  ;;  %v510_v20 = vpop.xlane.xlu1 %509  ;;  %v656_v14 = vadd.f32 1.0, %v795_v19 }
 0x16c   :  { %v507_v30 = vpop.xlane.xlu0 %506  ;;  %v799_v31 = vpop.eup %798  ;;  %v222_v34 = vadd.f32 1.0, %v797_v23  ;;  %824 = vpow2.f32 %v761_v63  ;;  %v763_v37 = vmul.f32 -1.442695, %v510_v20 }
 0x16d   :  { %v1335_v35 = vpop.eup %800  ;;  %v221_v36 = vadd.f32 1.0, %v799_v31  ;;  %826 = vpow2.f32 %v760_v18  ;;  %v762_v32 = vmul.f32 -1.442695, %v507_v30 }
 0x16e   :  { %v1337_v61 = vpop.eup %802  ;;  %828 = vrcp.f32 %v222_v34  ;;  %v657_v18 = vadd.f32 1.0, %v1335_v35 }
 0x16f   :  { %v805_v33 = vpop.eup %804  ;;  %830 = vrcp.f32 %v221_v36  ;;  %v516_v62 = vpop.xlane.xlu1 %515  ;;  %v658_v20 = vadd.f32 1.0, %v1337_v61 }
 0x170   :  { %v513_v57 = vpop.xlane.xlu0 %512  ;;  %v807_v38 = vpop.eup %806  ;;  %v224_v39 = vadd.f32 1.0, %v805_v33  ;;  %832 = vpow2.f32 %v763_v37  ;;  %v765_v40 = vmul.f32 -1.442695, %v516_v62  ;;  %v877_v33 = vld [vmem:[%s1393_s0 + $0x58] sm:$0xff] }
 0x171   :  { %v809_v58 = vpop.eup %808  ;;  %v223_v41 = vadd.f32 1.0, %v807_v38  ;;  %834 = vpow2.f32 %v762_v32  ;;  %v764_v42 = vmul.f32 -1.442695, %v513_v57 }
 0x172   :  { %v811_v43 = vpop.eup %810  ;;  %836 = vrcp.f32 %v224_v39  ;;  %v878_v39 = vld [vmem:[%s1393_s0 + $0x40] sm:$0xff] }
 0x173   :  { %v813_v44 = vpop.eup %812  ;;  %838 = vrcp.f32 %v223_v41  ;;  %v522_v49 = vpop.xlane.xlu1 %521 }
 0x174   :  { %v519_v55 = vpop.xlane.xlu0 %518  ;;  %v815_v50 = vpop.eup %814  ;;  %v226_v56 = vadd.f32 1.0, %v813_v44  ;;  %840 = vpow2.f32 %v765_v40  ;;  %v767_v29 = vmul.f32 -1.442695, %v522_v49 }
 0x175   :  { %v1339_v51 = vpop.eup %816  ;;  %v225_v13 = vadd.f32 1.0, %v815_v50  ;;  %842 = vpow2.f32 %v764_v42  ;;  %v766_v26 = vmul.f32 -1.442695, %v519_v55 }
 0x176   :  { %v1341_v52 = vpop.eup %818  ;;  %844 = vrcp.f32 %v226_v56 }
 0x177   :  { %v821_v53 = vpop.eup %820  ;;  %846 = vrcp.f32 %v225_v13 }
 0x178   :  { %v823_v27 = vpop.eup %822  ;;  %v339_v54 = vadd.f32 %v821_v53, %v809_v58  ;;  %v340_v4 = vadd.f32 %v821_v53, %v811_v43  ;;  %848 = vpow2.f32 %v767_v29 }
 0x179   :  { %v825_v59 = vpop.eup %824  ;;  %v341_v60 = vadd.f32 %v823_v27, %v809_v58  ;;  %v342_v45 = vadd.f32 %v823_v27, %v811_v43  ;;  %850 = vpow2.f32 %v766_v26 }
 0x17a   :  { %v827_v21 = vpop.eup %826  ;;  %852 = vrcp.f32 %v655_v3  ;;  %v355_v1 = vmul.f32 %v339_v54, %v1051_v6  ;;  %v356_v2 = vmul.f32 %v340_v4, %v1056_v7  ;;  %v548_v12 = vadd.f32 1.0, %v825_v59  ;;  %v881_v54 = vld [vmem:[%s1393_s0 + $0x68] sm:$0xff] }
 0x17b   :  { %v829_v46 = vpop.eup %828  ;;  %854 = vrcp.f32 %v656_v14  ;;  %v357_v25 = vmul.f32 %v341_v60, %v1081_v16  ;;  %v358_v15 = vmul.f32 %v342_v45, %v1086_v17  ;;  %v547_v11 = vadd.f32 1.0, %v827_v21  ;;  %v880_v14 = vld [vmem:[%s1393_s0 + $0x60] sm:$0xff] }
 0x17c   :  { %v831_v24 = vpop.eup %830  ;;  %371 = vst [vmem:[#allocation5] sm:$0xff] %v355_v1  ;;  %372 = vst [vmem:[#allocation5 + $0x8] sm:$0xff] %v356_v2  ;;  %v345_v28 = vadd.f32 %v829_v46, %v809_v58  ;;  %v346_v63 = vadd.f32 %v829_v46, %v811_v43  ;;  %856 = vrcp.f32 %v548_v12 }
 0x17d   :  { %v833_v22 = vpop.eup %832  ;;  %373 = vst [vmem:[#allocation5 + $0x10] sm:$0xff] %v357_v25  ;;  %374 = vst [vmem:[#allocation5 + $0x18] sm:$0xff] %v358_v15  ;;  %v343_v6 = vadd.f32 %v831_v24, %v809_v58  ;;  %v344_v0 = vadd.f32 %v831_v24, %v811_v43  ;;  %858 = vrcp.f32 %v547_v11  ;;  %v879_v58 = vld [vmem:[%s1393_s0 + $0x48] sm:$0xff] }
 0x17e   :  { %v835_v7 = vpop.eup %834  ;;  %v361_v16 = vmul.f32 %v345_v28, %v1176_v9  ;;  %v362_v17 = vmul.f32 %v346_v63, %v1181_v10  ;;  %v550_v19 = vadd.f32 1.0, %v833_v22 }
 0x17f   :  { %v837_v23 = vpop.eup %836  ;;  %v359_v30 = vmul.f32 %v343_v6, %v1134_v47  ;;  %v360_v31 = vmul.f32 %v344_v0, %v1139_v48  ;;  %v549_v34 = vadd.f32 1.0, %v835_v7  ;;  %v876_v48 = vld [vmem:[%s1393_s0 + $0x50] sm:$0xff] }
 0x180   :  { %v839_v37 = vpop.eup %838  ;;  %377 = vst [vmem:[#allocation5 + $0x30] sm:$0xff] %v361_v16  ;;  %378 = vst [vmem:[#allocation5 + $0x38] sm:$0xff] %v362_v17  ;;  %v349_v36 = vadd.f32 %v837_v23, %v1339_v51  ;;  %v350_v35 = vadd.f32 %v837_v23, %v1341_v52  ;;  %860 = vrcp.f32 %v550_v19 }
 0x181   :  { %v841_v9 = vpop.eup %840  ;;  %375 = vst [vmem:[#allocation5 + $0x20] sm:$0xff] %v359_v30  ;;  %376 = vst [vmem:[#allocation5 + $0x28] sm:$0xff] %v360_v31  ;;  %v347_v10 = vadd.f32 %v839_v37, %v1339_v51  ;;  %v348_v32 = vadd.f32 %v839_v37, %v1341_v52  ;;  %862 = vrcp.f32 %v549_v34 }
 0x182   :  { %v843_v47 = vpop.eup %842  ;;  %864 = vrcp.f32 %v657_v18  ;;  %v365_v61 = vmul.f32 %v876_v48, %v349_v36  ;;  %v366_v62 = vmul.f32 %v877_v33, %v350_v35  ;;  %v552_v57 = vadd.f32 1.0, %v841_v9 }
 0x183   :  { %v845_v38 = vpop.eup %844  ;;  %866 = vrcp.f32 %v658_v20  ;;  %v363_v40 = vmul.f32 %v878_v39, %v347_v10  ;;  %v364_v41 = vmul.f32 %v879_v58, %v348_v32  ;;  %v551_v42 = vadd.f32 1.0, %v843_v47 }
 0x184   :  { %v847_v43 = vpop.eup %846  ;;  %381 = vst [vmem:[#allocation5 + $0x50] sm:$0xff] %v365_v61  ;;  %382 = vst [vmem:[#allocation5 + $0x58] sm:$0xff] %v366_v62  ;;  %v353_v44 = vadd.f32 %v845_v38, %v1339_v51  ;;  %v354_v49 = vadd.f32 %v845_v38, %v1341_v52  ;;  %868 = vrcp.f32 %v552_v57 }
 0x185   :  { %v849_v55 = vpop.eup %848  ;;  %379 = vst [vmem:[#allocation5 + $0x40] sm:$0xff] %v363_v40  ;;  %380 = vst [vmem:[#allocation5 + $0x48] sm:$0xff] %v364_v41  ;;  %v351_v50 = vadd.f32 %v847_v43, %v1339_v51  ;;  %v352_v56 = vadd.f32 %v847_v43, %v1341_v52  ;;  %870 = vrcp.f32 %v551_v42 }
 0x186   :  { %v851_v29 = vpop.eup %850  ;;  %v369_v13 = vmul.f32 %v353_v44, %v1166_v5  ;;  %v370_v26 = vmul.f32 %v354_v49, %v1171_v8  ;;  %v554_v3 = vadd.f32 1.0, %v849_v55 }
 0x187   :  { %v853_v53 = vpop.eup %852  ;;  %v367_v27 = vmul.f32 %v880_v14, %v351_v50  ;;  %v368_v51 = vmul.f32 %v881_v54, %v352_v56  ;;  %v553_v4 = vadd.f32 1.0, %v851_v29 }
 0x188   :  { %v855_v52 = vpop.eup %854  ;;  %385 = vst [vmem:[#allocation5 + $0x70] sm:$0xff] %v369_v13  ;;  %386 = vst [vmem:[#allocation5 + $0x78] sm:$0xff] %v370_v26  ;;  %872 = vrcp.f32 %v554_v3 }
 0x189   :  { %v857_v5 = vpop.eup %856  ;;  %383 = vst [vmem:[#allocation5 + $0x60] sm:$0xff] %v367_v27  ;;  %384 = vst [vmem:[#allocation5 + $0x68] sm:$0xff] %v368_v51  ;;  %874 = vrcp.f32 %v553_v4 }
 0x18a   :  { %v859_v8 = vpop.eup %858  ;;  %v669_v59 = vadd.f32 %v857_v5, %v853_v53  ;;  %v670_v60 = vadd.f32 %v857_v5, %v855_v52 }
 0x18b   :  { %929 = shalt.err (!%p926_p9)
}
 0x18c   :  { %726 = dma.vmem_to_hbm [thread:$0]  %s721_s18, 2048, %s1402_s9, [#allocation4], %s965_s16, %s965_s16, %s966_s17   ;;  %v667_v45 = vadd.f32 %v859_v8, %v853_v53  ;;  %v668_v21 = vadd.f32 %v859_v8, %v855_v52  ;;  %v882_v1 = vld [vmem:[#allocation2 + $0x10] sm:$0xff]  ;;  %v883_v12 = vld [vmem:[#allocation2 + $0x18] sm:$0xff]  ;;  %v884_v15 = vld [vmem:[#allocation2] sm:$0xff] }
 0x18d   :  { %v685_v2 = vmul.f32 %v882_v1, %v669_v59  ;;  %v686_v46 = vmul.f32 %v883_v12, %v670_v60  ;;  %v861_v25 = vpop.eup %860  ;;  %v885_v24 = vld [vmem:[#allocation2 + $0x8] sm:$0xff]  ;;  %v886_v17 = vld [vmem:[#allocation2 + $0x30] sm:$0xff]  ;;  %v887_v23 = vld [vmem:[#allocation2 + $0x38] sm:$0xff]  ;;  %s969_s9 = smov [#allocation6]  }
 0x18e   :  { %v683_v11 = vmul.f32 %v884_v15, %v667_v45  ;;  %v684_v28 = vmul.f32 %v885_v24, %v668_v21  ;;  %v863_v63 = vpop.eup %862  ;;  %v673_v22 = vadd.f32 %v861_v25, %v853_v53  ;;  %v674_v6 = vadd.f32 %v861_v25, %v855_v52  ;;  %v888_v31 = vld [vmem:[#allocation2 + $0x20] sm:$0xff]  ;;  %v889_v37 = vld [vmem:[#allocation2 + $0x28] sm:$0xff]  ;;  %v890_v48 = vld [vmem:[#allocation2 + $0x50] sm:$0xff]  ;;  %s732_s24 = sshll.u32 %s969_s9, 4  ;;  %s733_s24 = int_to_ptr.vmem [resolvable:$true] %s732_s24 }
 0x18f   :  { %701 = vst [vmem:[#allocation6 + $0x10] sm:$0xff] %v685_v2  ;;  %702 = vst [vmem:[#allocation6 + $0x18] sm:$0xff] %v686_v46  ;;  %v865_v0 = vpop.eup %864  ;;  %v671_v7 = vadd.f32 %v863_v63, %v853_v53  ;;  %v672_v18 = vadd.f32 %v863_v63, %v855_v52  ;;  %v891_v33 = vld [vmem:[#allocation2 + $0x58] sm:$0xff]  ;;  %v892_v38 = vld [vmem:[#allocation2 + $0x40] sm:$0xff]  ;;  %s938_s25 = scalar_lea.vmem %s733_s24, 2048  ;;  %p943_p11 = scmp.lt.s32.totalorder %s733_s24, %s733_s24 }
 0x190   :  { %699 = vst [vmem:[#allocation6] sm:$0xff] %v683_v11  ;;  %700 = vst [vmem:[#allocation6 + $0x8] sm:$0xff] %v684_v28  ;;  %v867_v16 = vpop.eup %866  ;;  %v689_v19 = vmul.f32 %v886_v17, %v673_v22  ;;  %v690_v20 = vmul.f32 %v887_v23, %v674_v6  ;;  %v893_v40 = vld [vmem:[#allocation2 + $0x48] sm:$0xff]  ;;  %v894_v55 = vld [vmem:[#allocation2 + $0x70] sm:$0xff]  ;;  %p939_p10 = scmp.ne.s32.totalorder %s733_s24, %s938_s25  ;;  %p944_p12 = scmp.lt.s32.totalorder %s938_s25, %s938_s25 }
 0x191   :  { %v869_v30 = vpop.eup %868  ;;  %v687_v34 = vmul.f32 %v888_v31, %v671_v7  ;;  %v688_v36 = vmul.f32 %v889_v37, %v672_v18  ;;  %v895_v56 = vld [vmem:[#allocation2 + $0x78] sm:$0xff]  ;;  %v896_v13 = vld [vmem:[#allocation2 + $0x60] sm:$0xff]  ;;  %v897_v3 = vld [vmem:[#allocation2 + $0x68] sm:$0xff] }
 0x192   :  { %v871_v35 = vpop.eup %870  ;;  %705 = vst [vmem:[#allocation6 + $0x30] sm:$0xff] %v689_v19  ;;  %706 = vst [vmem:[#allocation6 + $0x38] sm:$0xff] %v690_v20  ;;  %v677_v9 = vadd.f32 %v869_v30, %v865_v0  ;;  %v678_v10 = vadd.f32 %v869_v30, %v867_v16  ;;  %p945_p13 = por %p944_p12, %p943_p11 }
 0x193   :  { %703 = vst [vmem:[#allocation6 + $0x20] sm:$0xff] %v687_v34  ;;  %704 = vst [vmem:[#allocation6 + $0x28] sm:$0xff] %v688_v36  ;;  %v675_v32 = vadd.f32 %v871_v35, %v865_v0  ;;  %v676_v47 = vadd.f32 %v871_v35, %v867_v16 }
 0x194   :  { %v693_v61 = vmul.f32 %v890_v48, %v677_v9  ;;  %v694_v62 = vmul.f32 %v891_v33, %v678_v10  ;;  %p946_p0 = pnand %p945_p13, %p939_p10 }
 0x195   :  { %v873_v57 = vpop.eup %872  ;;  %v691_v39 = vmul.f32 %v892_v38, %v675_v32  ;;  %v692_v58 = vmul.f32 %v893_v40, %v676_v47 }
 0x196   :  { %v875_v41 = vpop.eup %874  ;;  %709 = vst [vmem:[#allocation6 + $0x50] sm:$0xff] %v693_v61  ;;  %710 = vst [vmem:[#allocation6 + $0x58] sm:$0xff] %v694_v62  ;;  %v681_v42 = vadd.f32 %v873_v57, %v865_v0  ;;  %v682_v43 = vadd.f32 %v873_v57, %v867_v16 }
 0x197   :  { %707 = vst [vmem:[#allocation6 + $0x40] sm:$0xff] %v691_v39  ;;  %708 = vst [vmem:[#allocation6 + $0x48] sm:$0xff] %v692_v58  ;;  %v679_v44 = vadd.f32 %v875_v41, %v865_v0  ;;  %v680_v49 = vadd.f32 %v875_v41, %v867_v16 }
 0x198   :  { %v697_v50 = vmul.f32 %v894_v55, %v681_v42  ;;  %v698_v29 = vmul.f32 %v895_v56, %v682_v43 }
 0x199   :  { %v695_v26 = vmul.f32 %v896_v13, %v679_v44  ;;  %v696_v53 = vmul.f32 %v897_v3, %v680_v49 }
 0x19a   :  { %713 = vst [vmem:[#allocation6 + $0x70] sm:$0xff] %v697_v50  ;;  %714 = vst [vmem:[#allocation6 + $0x78] sm:$0xff] %v698_v29 }
 0x19b   :  { %711 = vst [vmem:[#allocation6 + $0x60] sm:$0xff] %v695_v26  ;;  %712 = vst [vmem:[#allocation6 + $0x68] sm:$0xff] %v696_v53 }
 0x19c   :  { %949 = shalt.err (!%p946_p0)
}
 0x19d   :  { %738 = dma.vmem_to_hbm [thread:$0]  %s733_s24, 2048, %s1403_s10, [#allocation7], %s965_s16, %s965_s16, %s966_s17  }
 0x19e   :  { %960 = dma.done.wait [#allocation4], 2048  }
 0x19f   :  { %961 = vsyncadd [#allocation4], 4294965248 }
 0x1a0   :  { %962 = dma.done.wait [#allocation7], 2048  }
 0x1a1   :  { %963 = vsyncadd [#allocation7], 4294965248 }
 0x1a2   :  { %745 = vsyncpa [#allocation3], 1 }
 0x1a3   :  { %746 = vsyncpa [#allocation4], 1 }
 0x1a4   :  { %747 = vsyncpa [#allocation7], 1 }

</bundles_post_ra>
